<compile_context>
chip_gen: v6e
topology: v6e:2x2x1
jax: 0.10.0
libtpu: 0.0.40
codegen_flags: <defaults>
</compile_context>

<pallas_src>
import functools

import jax
import jax.numpy as jnp
from jax.experimental import pallas as pl
from jax.experimental.pallas import tpu as pltpu


def critic_kernel(x_ref, a_ref,
                  w1o_ref, w1a_ref, b1_ref,
                  w2_ref, b2_ref,
                  w3_ref, b3_ref,
                  w4_ref, b4_ref,
                  out_ref):
    # fc1: fused concat via split weights; 1/max_action pre-folded into w1a.
    h = jnp.dot(x_ref[...].astype(jnp.bfloat16), w1o_ref[...],
                preferred_element_type=jnp.float32)
    h = h + jnp.dot(a_ref[...].astype(jnp.bfloat16), w1a_ref[...],
                    preferred_element_type=jnp.float32)
    h = jnp.maximum(h + b1_ref[...], 0.0)                       # [TB, 256] f32
    # fc2 / fc3 (bf16 MXU inputs, f32 accumulate + elementwise)
    h = jnp.maximum(
        jnp.dot(h.astype(jnp.bfloat16), w2_ref[...],
                preferred_element_type=jnp.float32) + b2_ref[...], 0.0)
    h = jnp.maximum(
        jnp.dot(h.astype(jnp.bfloat16), w3_ref[...],
                preferred_element_type=jnp.float32) + b3_ref[...], 0.0)
    # q_out (N=1): VPU multiply + XLU lane reduce; keeps the MXU free.
    q = jnp.sum(h * w4_ref[...], axis=-1, keepdims=True) + b4_ref[...]
    out_ref[...] = q                                            # [TB, 1]


def _round_up(n, m):
    return ((n + m - 1) // m) * m


def make_critic_params(key, obs, goal, action, hidden=256):
    """f32 params. Weights stored [in, out] (transpose of PyTorch), biases [1, out]."""
    in_dim = obs + goal + action
    dims = [(in_dim, hidden), (hidden, hidden), (hidden, hidden), (hidden, 1)]
    params = []
    for (din, dout) in dims:
        kw, kb, key = jax.random.split(key, 3)
        # PyTorch Linear default init: U(-1/sqrt(fan_in), 1/sqrt(fan_in))
        bound = 1.0 / jnp.sqrt(jnp.float32(din))
        w = jax.random.uniform(kw, (din, dout), jnp.float32, -bound, bound)
        b = jax.random.uniform(kb, (1, dout), jnp.float32, -bound, bound)
        params.append((w, b))
    return params


def prepare_kernel_params(params, n_x, max_action):
    """Kernel layout: fc1 split (obs+goal vs action) with 1/max_action folded
    into the action block; matmul weights in bf16; q_out weight as a [1, 256]
    f32 row for the VPU path; biases f32."""
    (w1, b1), (w2, b2), (w3, b3), (w4, b4) = params
    w1o = w1[:n_x].astype(jnp.bfloat16)                   # [obs+goal, 256]
    w1a = (w1[n_x:] / max_action).astype(jnp.bfloat16)    # [action,   256]
    return (w1o, w1a, b1.astype(jnp.float32),
            w2.astype(jnp.bfloat16), b2.astype(jnp.float32),
            w3.astype(jnp.bfloat16), b3.astype(jnp.float32),
            w4.reshape(1, -1).astype(jnp.float32),        # [1, 256]
            b4.reshape(1, 1).astype(jnp.float32))         # [1, 1]


@functools.partial(jax.jit, static_argnames=("tb",))
def critic_forward(x, actions, kparams, *, tb=1024):
    x = x.astype(jnp.float32)
    a = actions.astype(jnp.float32)
    B = x.shape[0]

    # Batch tile: multiple of 8 sublanes; pad batch up to a whole number of tiles.
    TB = min(tb, _round_up(B, 8))
    B_pad = _round_up(B, TB)
    if B_pad != B:
        x = jnp.pad(x, ((0, B_pad - B), (0, 0)))
        a = jnp.pad(a, ((0, B_pad - B), (0, 0)))

    n_x, n_a = x.shape[1], a.shape[1]
    grid = (B_pad // TB,)

    def batch_spec(feat):
        return pl.BlockSpec((TB, feat), lambda i: (i, 0))

    def resident_spec(arr):
        # Same block index every step -> parameter stays resident in VMEM.
        return pl.BlockSpec(arr.shape, lambda i: (0, 0))

    out = pl.pallas_call(
        critic_kernel,
        out_shape=jax.ShapeDtypeStruct((B_pad, 1), jnp.float32),
        grid=grid,
        in_specs=[batch_spec(n_x), batch_spec(n_a)]
                 + [resident_spec(p) for p in kparams],
        out_specs=pl.BlockSpec((TB, 1), lambda i: (i, 0)),
        compiler_params=pltpu.CompilerParams(
            dimension_semantics=("parallel",)),
    )(x, a, *kparams)
    return out[:B]


def critic_reference(x, actions, params, max_action):
    """Pure-JAX f32 reference matching the PyTorch forward."""
    h = jnp.concatenate([x, actions / max_action], axis=1)
    for i, (w, b) in enumerate(params):
        h = h @ w + b
        if i < len(params) - 1:
            h = jnp.maximum(h, 0.0)
    return h


if __name__ == "__main__":
    # env_params-like small shapes
    obs, goal, action = 10, 5, 4
    max_action = 2.0
    B = 32  # small, but enough for a multi-step batch grid with tb=8 below

    key = jax.random.PRNGKey(0)
    kx, ka, kp = jax.random.split(key, 3)
    x = jax.random.normal(kx, (B, obs + goal), jnp.float32)
    actions = jax.random.uniform(ka, (B, action), jnp.float32,
                                 -max_action, max_action)

    params = make_critic_params(kp, obs, goal, action)
    kparams = prepare_kernel_params(params, obs + goal, max_action)

    # tb=8 only to exercise the pipelined batch grid at this tiny test size;
    # production default is tb=1024.
    q = critic_forward(x, actions, kparams, tb=8)
    q = jax.block_until_ready(q)

    q_ref = critic_reference(x, actions, params, max_action)
    assert q.shape == (B, 1), q.shape
    # bf16 weights on the MXU -> compare against the f32 reference loosely.
    assert jnp.allclose(q, q_ref, atol=2e-2, rtol=2e-2), (q, q_ref)

    print("KERNEL_OK")
</pallas_src>

<mosaic_0001>
module attributes {stable_mosaic.version = 11 : i64} {
  func.func @critic_kernel(%arg0: i32, %arg1: memref<8x15xf32, #tpu.memory_space<vmem>>, %arg2: memref<8x4xf32, #tpu.memory_space<vmem>>, %arg3: memref<15x256xbf16, #tpu.memory_space<vmem>>, %arg4: memref<4x256xbf16, #tpu.memory_space<vmem>>, %arg5: memref<1x256xf32, #tpu.memory_space<vmem>>, %arg6: memref<256x256xbf16, #tpu.memory_space<vmem>>, %arg7: memref<1x256xf32, #tpu.memory_space<vmem>>, %arg8: memref<256x256xbf16, #tpu.memory_space<vmem>>, %arg9: memref<1x256xf32, #tpu.memory_space<vmem>>, %arg10: memref<1x256xf32, #tpu.memory_space<vmem>>, %arg11: memref<1x1xf32, #tpu.memory_space<vmem>>, %arg12: memref<8x1xf32, #tpu.memory_space<vmem>>) attributes {dimension_semantics = [#tpu.dimension_semantics<parallel>], iteration_bounds = array<i64: 4>, scalar_prefetch = 0 : i64, scratch_operands = 0 : i64, tpu.core_type = #tpu.core_type<tc>, window_params = [{transform_indices = @transform_0, window_bounds = array<i64: 8, 15>}, {transform_indices = @transform_1, window_bounds = array<i64: 8, 4>}, {pipeline_mode = #tpu.pipeline_mode<synchronous>, transform_indices = @transform_2, window_bounds = array<i64: 15, 256>}, {pipeline_mode = #tpu.pipeline_mode<synchronous>, transform_indices = @transform_3, window_bounds = array<i64: 4, 256>}, {pipeline_mode = #tpu.pipeline_mode<synchronous>, transform_indices = @transform_4, window_bounds = array<i64: 1, 256>}, {pipeline_mode = #tpu.pipeline_mode<synchronous>, transform_indices = @transform_5, window_bounds = array<i64: 256, 256>}, {pipeline_mode = #tpu.pipeline_mode<synchronous>, transform_indices = @transform_6, window_bounds = array<i64: 1, 256>}, {pipeline_mode = #tpu.pipeline_mode<synchronous>, transform_indices = @transform_7, window_bounds = array<i64: 256, 256>}, {pipeline_mode = #tpu.pipeline_mode<synchronous>, transform_indices = @transform_8, window_bounds = array<i64: 1, 256>}, {pipeline_mode = #tpu.pipeline_mode<synchronous>, transform_indices = @transform_9, window_bounds = array<i64: 1, 256>}, {pipeline_mode = #tpu.pipeline_mode<synchronous>, transform_indices = @transform_10, window_bounds = array<i64: 1, 1>}, {transform_indices = @transform_11, window_bounds = array<i64: 8, 1>}]} {
    %c0 = arith.constant 0 : index
    %c0_0 = arith.constant 0 : index
    %0 = vector.load %arg1[%c0, %c0_0] : memref<8x15xf32, #tpu.memory_space<vmem>>, vector<8x15xf32>
    %1 = arith.truncf %0 : vector<8x15xf32> to vector<8x15xbf16>
    %c0_1 = arith.constant 0 : index
    %c0_2 = arith.constant 0 : index
    %2 = vector.load %arg3[%c0_1, %c0_2] : memref<15x256xbf16, #tpu.memory_space<vmem>>, vector<15x256xbf16>
    %cst = arith.constant dense<0.000000e+00> : vector<8x256xf32>
    %3 = tpu.matmul %1, %2, %cst {dimension_numbers = #tpu.dot_dimension_numbers<[1], [0], [0], [1], [0, 0, 1, 1], [], []>} : vector<8x15xbf16>, vector<15x256xbf16>, vector<8x256xf32> -> vector<8x256xf32>
    %c0_3 = arith.constant 0 : index
    %c0_4 = arith.constant 0 : index
    %4 = vector.load %arg2[%c0_3, %c0_4] : memref<8x4xf32, #tpu.memory_space<vmem>>, vector<8x4xf32>
    %5 = arith.truncf %4 : vector<8x4xf32> to vector<8x4xbf16>
    %c0_5 = arith.constant 0 : index
    %c0_6 = arith.constant 0 : index
    %6 = vector.load %arg4[%c0_5, %c0_6] : memref<4x256xbf16, #tpu.memory_space<vmem>>, vector<4x256xbf16>
    %cst_7 = arith.constant dense<0.000000e+00> : vector<8x256xf32>
    %7 = tpu.matmul %5, %6, %cst_7 {dimension_numbers = #tpu.dot_dimension_numbers<[1], [0], [0], [1], [0, 0, 1, 1], [], []>} : vector<8x4xbf16>, vector<4x256xbf16>, vector<8x256xf32> -> vector<8x256xf32>
    %8 = arith.addf %3, %7 : vector<8x256xf32>
    %c0_8 = arith.constant 0 : index
    %c0_9 = arith.constant 0 : index
    %9 = vector.load %arg5[%c0_8, %c0_9] : memref<1x256xf32, #tpu.memory_space<vmem>>, vector<1x256xf32>
    %10 = vector.broadcast %9 : vector<1x256xf32> to vector<8x256xf32>
    %11 = arith.addf %8, %10 : vector<8x256xf32>
    %cst_10 = arith.constant 0.000000e+00 : f32
    %12 = vector.broadcast %cst_10 : f32 to vector<8x256xf32>
    %13 = arith.maximumf %11, %12 : vector<8x256xf32>
    %14 = arith.truncf %13 : vector<8x256xf32> to vector<8x256xbf16>
    %c0_11 = arith.constant 0 : index
    %c0_12 = arith.constant 0 : index
    %15 = vector.load %arg6[%c0_11, %c0_12] : memref<256x256xbf16, #tpu.memory_space<vmem>>, vector<256x256xbf16>
    %cst_13 = arith.constant dense<0.000000e+00> : vector<8x256xf32>
    %16 = tpu.matmul %14, %15, %cst_13 {dimension_numbers = #tpu.dot_dimension_numbers<[1], [0], [0], [1], [0, 0, 1, 1], [], []>} : vector<8x256xbf16>, vector<256x256xbf16>, vector<8x256xf32> -> vector<8x256xf32>
    %c0_14 = arith.constant 0 : index
    %c0_15 = arith.constant 0 : index
    %17 = vector.load %arg7[%c0_14, %c0_15] : memref<1x256xf32, #tpu.memory_space<vmem>>, vector<1x256xf32>
    %18 = vector.broadcast %17 : vector<1x256xf32> to vector<8x256xf32>
    %19 = arith.addf %16, %18 : vector<8x256xf32>
    %cst_16 = arith.constant 0.000000e+00 : f32
    %20 = vector.broadcast %cst_16 : f32 to vector<8x256xf32>
    %21 = arith.maximumf %19, %20 : vector<8x256xf32>
    %22 = arith.truncf %21 : vector<8x256xf32> to vector<8x256xbf16>
    %c0_17 = arith.constant 0 : index
    %c0_18 = arith.constant 0 : index
    %23 = vector.load %arg8[%c0_17, %c0_18] : memref<256x256xbf16, #tpu.memory_space<vmem>>, vector<256x256xbf16>
    %cst_19 = arith.constant dense<0.000000e+00> : vector<8x256xf32>
    %24 = tpu.matmul %22, %23, %cst_19 {dimension_numbers = #tpu.dot_dimension_numbers<[1], [0], [0], [1], [0, 0, 1, 1], [], []>} : vector<8x256xbf16>, vector<256x256xbf16>, vector<8x256xf32> -> vector<8x256xf32>
    %c0_20 = arith.constant 0 : index
    %c0_21 = arith.constant 0 : index
    %25 = vector.load %arg9[%c0_20, %c0_21] : memref<1x256xf32, #tpu.memory_space<vmem>>, vector<1x256xf32>
    %26 = vector.broadcast %25 : vector<1x256xf32> to vector<8x256xf32>
    %27 = arith.addf %24, %26 : vector<8x256xf32>
    %cst_22 = arith.constant 0.000000e+00 : f32
    %28 = vector.broadcast %cst_22 : f32 to vector<8x256xf32>
    %29 = arith.maximumf %27, %28 : vector<8x256xf32>
    %c0_23 = arith.constant 0 : index
    %c0_24 = arith.constant 0 : index
    %30 = vector.load %arg10[%c0_23, %c0_24] : memref<1x256xf32, #tpu.memory_space<vmem>>, vector<1x256xf32>
    %31 = vector.broadcast %30 : vector<1x256xf32> to vector<8x256xf32>
    %32 = arith.mulf %29, %31 : vector<8x256xf32>
    %cst_25 = arith.constant dense<0.000000e+00> : vector<8xf32>
    %33 = vector.multi_reduction <add>, %32, %cst_25 [1] : vector<8x256xf32> to vector<8xf32>
    %34 = vector.shape_cast %33 : vector<8xf32> to vector<8x1xf32>
    %c0_26 = arith.constant 0 : index
    %c0_27 = arith.constant 0 : index
    %35 = vector.load %arg11[%c0_26, %c0_27] : memref<1x1xf32, #tpu.memory_space<vmem>>, vector<1x1xf32>
    %36 = vector.broadcast %35 : vector<1x1xf32> to vector<8x1xf32>
    %37 = arith.addf %34, %36 : vector<8x1xf32>
    %c0_28 = arith.constant 0 : index
    %c0_29 = arith.constant 0 : index
    %38 = vector.load %arg12[%c0_28, %c0_29] : memref<8x1xf32, #tpu.memory_space<vmem>>, vector<8x1xf32>
    tpu.vector_store %arg12[%c0_28, %c0_29], %37 {strides = array<i32>} : memref<8x1xf32, #tpu.memory_space<vmem>>, vector<8x1xf32>,
    return
  }
  func.func @transform_0(%arg0: i32) -> (i32, i32) {
    %c0_i32 = arith.constant 0 : i32
    %c0_i32_0 = arith.constant 0 : i32
    return %arg0, %c0_i32 : i32, i32
  }
  func.func @transform_1(%arg0: i32) -> (i32, i32) {
    %c0_i32 = arith.constant 0 : i32
    %c0_i32_0 = arith.constant 0 : i32
    return %arg0, %c0_i32 : i32, i32
  }
  func.func @transform_2(%arg0: i32) -> (i32, i32) {
    %c0_i32 = arith.constant 0 : i32
    %c0_i32_0 = arith.constant 0 : i32
    %c0_i32_1 = arith.constant 0 : i32
    return %c0_i32, %c0_i32_0 : i32, i32
  }
  func.func @transform_3(%arg0: i32) -> (i32, i32) {
    %c0_i32 = arith.constant 0 : i32
    %c0_i32_0 = arith.constant 0 : i32
    %c0_i32_1 = arith.constant 0 : i32
    return %c0_i32, %c0_i32_0 : i32, i32
  }
  func.func @transform_4(%arg0: i32) -> (i32, i32) {
    %c0_i32 = arith.constant 0 : i32
    %c0_i32_0 = arith.constant 0 : i32
    %c0_i32_1 = arith.constant 0 : i32
    return %c0_i32, %c0_i32_0 : i32, i32
  }
  func.func @transform_5(%arg0: i32) -> (i32, i32) {
    %c0_i32 = arith.constant 0 : i32
    %c0_i32_0 = arith.constant 0 : i32
    %c0_i32_1 = arith.constant 0 : i32
    return %c0_i32, %c0_i32_0 : i32, i32
  }
  func.func @transform_6(%arg0: i32) -> (i32, i32) {
    %c0_i32 = arith.constant 0 : i32
    %c0_i32_0 = arith.constant 0 : i32
    %c0_i32_1 = arith.constant 0 : i32
    return %c0_i32, %c0_i32_0 : i32, i32
  }
  func.func @transform_7(%arg0: i32) -> (i32, i32) {
    %c0_i32 = arith.constant 0 : i32
    %c0_i32_0 = arith.constant 0 : i32
    %c0_i32_1 = arith.constant 0 : i32
    return %c0_i32, %c0_i32_0 : i32, i32
  }
  func.func @transform_8(%arg0: i32) -> (i32, i32) {
    %c0_i32 = arith.constant 0 : i32
    %c0_i32_0 = arith.constant 0 : i32
    %c0_i32_1 = arith.constant 0 : i32
    return %c0_i32, %c0_i32_0 : i32, i32
  }
  func.func @transform_9(%arg0: i32) -> (i32, i32) {
    %c0_i32 = arith.constant 0 : i32
    %c0_i32_0 = arith.constant 0 : i32
    %c0_i32_1 = arith.constant 0 : i32
    return %c0_i32, %c0_i32_0 : i32, i32
  }
  func.func @transform_10(%arg0: i32) -> (i32, i32) {
    %c0_i32 = arith.constant 0 : i32
    %c0_i32_0 = arith.constant 0 : i32
    %c0_i32_1 = arith.constant 0 : i32
    return %c0_i32, %c0_i32_0 : i32, i32
  }
  func.func @transform_11(%arg0: i32) -> (i32, i32) {
    %c0_i32 = arith.constant 0 : i32
    %c0_i32_0 = arith.constant 0 : i32
    return %arg0, %c0_i32 : i32, i32
  }
}

</mosaic_0001>

<bundles_post_ra>
// kernel: critic_forward.1
= control target key start
LH: loop header
LB: loop body
LE: loop exit
PB: predicated region body
PF: predicated region fallthrough
CT: control target
= control target key end

     0   :  { %s1636_s0 = inlined_call_operand.vmem [shape: f32[32,15], index: 0, kind: input, shape index: {}]   ;;  %s1637_s1 = inlined_call_operand.vmem [shape: f32[32,4], index: 1, kind: input, shape index: {}]   ;;  %s1638_s2 = inlined_call_operand.vmem [shape: bf16[15,256], index: 2, kind: input, shape index: {}]   ;;  %s1639_s3 = inlined_call_operand.vmem [shape: bf16[4,256], index: 3, kind: input, shape index: {}]   ;;  %s1640_s4 = inlined_call_operand.vmem [shape: f32[1,256], index: 4, kind: input, shape index: {}]   ;;  %s1641_s5 = inlined_call_operand.hbm [shape: bf16[256,256], index: 5, kind: input, shape index: {}]   ;;  %s1642_s6 = inlined_call_operand.vmem [shape: f32[1,256], index: 6, kind: input, shape index: {}]   ;;  %s1643_s7 = inlined_call_operand.hbm [shape: bf16[256,256], index: 7, kind: input, shape index: {}]   ;;  %s1644_s8 = inlined_call_operand.vmem [shape: f32[1,256], index: 8, kind: input, shape index: {}]   ;;  %s1645_s9 = inlined_call_operand.vmem [shape: f32[1,256], index: 9, kind: input, shape index: {}]   ;;  %s1646_s10 = inlined_call_operand.<no memory space> [shape: f32[1,1], index: 10, kind: input, shape index: {}]   ;;  %s1647_s11 = inlined_call_operand.vmem [shape: f32[32,1], index: 11, kind: output, shape index: {}]  }
   0x1   :  { %v16_v0 = vstv %s1646_s10 }
   0x2   :  { %17 = vst [vmem:[#allocation2] sm:$0x1] %v16_v0 }
   0x3   :  { %18 = vsyncpa [#allocation4], 0 }
   0x4   :  { %19 = vsyncpa [#allocation6], 0  ;;  %s1545_s19 = smov 0  }
   0x5 LB: > { %s1551_s20 = sadd.s32 4294967295, %s1474_s19   ;;  %p1193_p0 = scmp.ge.s32.totalorder %s1474_s19, 1  ;;  %s1474_s19 = sphi %s1545_s19, %s25_s19  }
   0x6   : > { %p297_p1 = scmp.lt.s32.totalorder %s1474_s19, 5  ;;  %s1476_s10 = smov [#allocation3]  }
   0x7   : > { %s318_s21 = sshll.u32 %s1476_s10, 4  ;;  %p1291_p3 = scmp.eq.s32.totalorder %s1551_s20, 0  ;;  %s319_s21 = int_to_ptr.vmem [resolvable:$true] %s318_s21 }
   0x8   : > { %p1555_p2 = pnand %p1193_p0, %p297_p1  ;;  %s1477_s23 = smov [#allocation5]  }
   0x9   : > { %s334_s24 = sshll.u32 %s1477_s23, 4  ;;  %s1419_s26 = scalar_lea.vmem %s319_s21, 4096  ;;  %s335_s24 = int_to_ptr.vmem [resolvable:$true] %s334_s24 }
   0xa   : > { %p1284_p4 = pneg %p1555_p2  ;;  %p1420_p7 = scmp.ne.s32.totalorder %s319_s21, %s1419_s26 }
   0xb   : > { %p1427_p10 = scmp.lt.s32.totalorder %s319_s21, %s319_s21  ;;  %p1428_p11 = scmp.lt.s32.totalorder %s1419_s26, %s1419_s26 }
   0xc   : > { %p1564_p5 = pnand %p1291_p3, %p1284_p4 }
   0xd   : > { %p1429_p12 = por %p1428_p11, %p1427_p10 }
   0xe   : > { %p1410_p6 = pneg %p1564_p5 }
  0x10   : > { %p1422_p8 = pnand %p1420_p7, %p1410_p6 }
  0x12   : > { %p1423_p9 = pneg %p1422_p8 }
  0x14   : > { %p1430_p13 = pnand %p1429_p12, %p1423_p9 }
  0x16   : > { %1433 = shalt.err (!%p1430_p13)
}
  0x17   : > { %s1478_s27 = smov 128   ;;  %s1479_s28 = smov 8  }
  0x18   : > { %1287 = dma.hbm_to_vmem [thread:$0]  (!%p1564_p5), %s1641_s5, 4096, %s319_s21, [#allocation4], %s1478_s27, %s1478_s27, %s1479_s28  }
  0x19   : > { %s1445_s12 = scalar_lea.vmem %s335_s24, 4096  ;;  %p1453_p7 = scmp.lt.s32.totalorder %s335_s24, %s335_s24 }
  0x1a   : > { %p1446_p0 = scmp.ne.s32.totalorder %s335_s24, %s1445_s12  ;;  %p1454_p8 = scmp.lt.s32.totalorder %s1445_s12, %s1445_s12 }
  0x1c   : > { %p1448_p1 = pnand %p1446_p0, %p1410_p6  ;;  %p1455_p10 = por %p1454_p8, %p1453_p7 }
  0x1e   : > { %p1449_p4 = pneg %p1448_p1 }
  0x20   : > { %p1456_p9 = pnand %p1455_p10, %p1449_p4 }
  0x22   : > { %1459 = shalt.err (!%p1456_p9)
}
  0x23   : > { %1290 = dma.hbm_to_vmem [thread:$0]  (!%p1564_p5), %s1643_s7, 4096, %s335_s24, [#allocation6], %s1478_s27, %s1478_s27, %s1479_s28  }
  0x24   : > { %373 = sbr.rel (%p1555_p2) target bundleno = 804 (0x324), region = 64 }
  0x29   : > { %1465 = dma.done.wait (%p1291_p3), [#allocation4], 4096  }
  0x2a   : > { %1467 = vsyncadd (%p1291_p3), [#allocation4], 4294963200 }
  0x2b   : > { %1469 = dma.done.wait (%p1291_p3), [#allocation6], 4096  }
  0x2c   : > { %1471 = vsyncadd (%p1291_p3), [#allocation6], 4294963200  ;;  %vm512_vm0 = vcmask 1046528   ;;  %p419_p6 = scmp.lt.s32.totalorder %s1551_s20, 3  ;;  %v1480_v1 = vmov 0   ;;  %vm513_vm1 = vcmask 1047552  }
  0x2d   : > { %491 = vmatprep.mubr.bf16.mxu0 %v1480_v1  ;;  %554 = vmatprep.mubr.bf16.mxu1 %v1480_v1  ;;  %v1481_v2 = vmov 65535   ;;  %vm452_vm2 = vcmask 1041408   ;;  %v1203_v5 = vld.sshfl [vmem:[%s1639_s3] sm:$0x33 pattern:$0x76325410] }
  0x2e   : > { %v514_v3 = vsel %vm512_vm0, 4294967295, %v1481_v2  ;;  %s1651_s20 = smov (!%p419_p6, %s1551_s20), 3  ;;  %v447_v6 = vcombine.high %v1203_v5, %v1203_v5  ;;  %v454_v7 = vsel %vm452_vm2, %v1203_v5, 0  ;;  %v1309_v8 = vld [vmem:[%s1638_s2 + $0x4] ss:$8 sps:$4 sm:$0xff]   ;;  %vm448_vm3 = vcmask 31744  }
  0x2f   : > { %s1598_s15 = sshll.u32 %s1651_s20, 3  ;;  %v515_v4 = vsel %vm513_vm1, %v514_v3, 0  ;;  %v1311_v9 = vld [vmem:[%s1638_s2] ss:$8 sps:$4 sm:$0xff]   ;;  %v1312_v16 = vld [vmem:[#allocation3 + $0x70] ss:$8 sps:$4 sm:$0xff]  }
  0x30   : > { %s426_s18 = scalar_lea.vmem %s1637_s1, %s1598_s15  ;;  %s422_s22 = scalar_lea.vmem %s1636_s0, %s1598_s15  ;;  %1204 = vmatprep.subr.msk.bf16.mxu0 %vm452_vm2, %v447_v6  ;;  %v520_v12 = vand.u32 %v1309_v8, %v515_v4  ;;  %v517_v13 = vand.u32 %v1311_v9, %v515_v4  ;;  %v1314_v15 = vld [vmem:[#allocation3 + $0x74] ss:$8 sps:$4 sm:$0xff]   ;;  %v1317_v18 = vld [vmem:[#allocation3 + $0x64] ss:$8 sps:$4 sm:$0xff]   ;;  %vm508_vm4 = vcmask 121856   ;;  %vm1102_vm5 = vcmask 7168  }
  0x31   : > { %v436_v10 = vld [vmem:[%s426_s18] sm:$0xff]  ;;  %474 = vmatpush1.bf16.msra.mxu0 %v454_v7  ;;  %v1318_v21 = vld [vmem:[#allocation3 + $0x50] ss:$8 sps:$4 sm:$0xff]   ;;  %s430_s21 = scalar_lea.vmem %s1647_s11, %s1598_s15 }
  0x32   : > { %v432_v11 = vld [vmem:[%s422_s22] sm:$0xff]  ;;  %v437_v14 = vpack.c.bf16 %v436_v10, %v436_v10  ;;  %536 = vmatprep.subr.bf16.mxu1 %v520_v12  ;;  %785 = vmatprep.subr.bf16.mxu0 %v1314_v15  ;;  %v1324_v25 = vld [vmem:[#allocation3 + $0x30] ss:$8 sps:$4 sm:$0xff]   ;;  %v565_v12 = vlaneseq }
  0x33   : > { %v433_v17 = vpack.c.bf16 %v432_v11, %v432_v11  ;;  %537 = vmatpush1.bf16.msra.mxu1 %v517_v13  ;;  %v1315_v19 = vld [vmem:[#allocation3 + $0x60] ss:$8 sps:$4 sm:$0xff]   ;;  %v1320_v20 = vld [vmem:[#allocation3 + $0x54] ss:$8 sps:$4 sm:$0xff]   ;;  %v1323_v22 = vld [vmem:[#allocation3 + $0x44] ss:$8 sps:$4 sm:$0xff]  }
  0x34   : > { %1205 = vmatmul.mubr.msk.bf16.vlgmr.msra.gmra.mxu0 %vm448_vm3, %v437_v14  ;;  %v1321_v23 = vld [vmem:[#allocation3 + $0x40] ss:$8 sps:$4 sm:$0xff]   ;;  %v1326_v24 = vld [vmem:[#allocation3 + $0x34] ss:$8 sps:$4 sm:$0xff]   ;;  %v1329_v26 = vld [vmem:[#allocation3 + $0x24] ss:$8 sps:$4 sm:$0xff]  }
  0x35   : > { %786 = vmatpush1.bf16.msra.mxu0 %v1312_v16  ;;  %v1327_v27 = vld [vmem:[#allocation3 + $0x20] ss:$8 sps:$4 sm:$0xff]   ;;  %v1332_v28 = vld [vmem:[#allocation3 + $0x14] ss:$8 sps:$4 sm:$0xff]   ;;  %v1330_v29 = vld [vmem:[#allocation3 + $0x10] ss:$8 sps:$4 sm:$0xff]  }
  0x36   : > { %1208 = vmatmul.mubr.msk.bf16.vlgmr.msra.gmra.mxu1 %vm508_vm4, %v433_v17  ;;  %787 = vmatprep.subr.bf16.mxu0 %v1317_v18  ;;  %v1335_v30 = vld [vmem:[#allocation3 + $0x4] ss:$8 sps:$4 sm:$0xff]   ;;  %v1333_v31 = vld [vmem:[#allocation3] ss:$8 sps:$4 sm:$0xff]   ;;  %v1338_v32 = vld [vmem:[#allocation3 + $0xf4] ss:$8 sps:$4 sm:$0xff]  }
  0x37   : > { %v1336_v33 = vld [vmem:[#allocation3 + $0xf0] ss:$8 sps:$4 sm:$0xff]   ;;  %v1341_v34 = vld [vmem:[#allocation3 + $0xe4] ss:$8 sps:$4 sm:$0xff]   ;;  %v1339_v35 = vld [vmem:[#allocation3 + $0xe0] ss:$8 sps:$4 sm:$0xff]  }
  0x38   : > { %v1344_v36 = vld [vmem:[#allocation3 + $0xd4] ss:$8 sps:$4 sm:$0xff]   ;;  %v1342_v37 = vld [vmem:[#allocation3 + $0xd0] ss:$8 sps:$4 sm:$0xff]   ;;  %v1347_v38 = vld [vmem:[#allocation3 + $0xc4] ss:$8 sps:$4 sm:$0xff]  }
  0x39   : > { %788 = vmatpush1.bf16.msra.mxu0 %v1315_v19  ;;  %v1345_v39 = vld [vmem:[#allocation3 + $0xc0] ss:$8 sps:$4 sm:$0xff]   ;;  %v1350_v40 = vld [vmem:[#allocation3 + $0xb4] ss:$8 sps:$4 sm:$0xff]   ;;  %v1348_v41 = vld [vmem:[#allocation3 + $0xb0] ss:$8 sps:$4 sm:$0xff]  }
  0x3a   : > { %789 = vmatprep.subr.bf16.mxu0 %v1320_v20  ;;  %v1353_v42 = vld [vmem:[#allocation3 + $0xa4] ss:$8 sps:$4 sm:$0xff]   ;;  %v1351_v43 = vld [vmem:[#allocation3 + $0xa0] ss:$8 sps:$4 sm:$0xff]   ;;  %v1356_v44 = vld [vmem:[#allocation3 + $0x94] ss:$8 sps:$4 sm:$0xff]  }
  0x3b   : > { %v1354_v45 = vld [vmem:[#allocation3 + $0x90] ss:$8 sps:$4 sm:$0xff]   ;;  %v1359_v46 = vld [vmem:[#allocation3 + $0x84] ss:$8 sps:$4 sm:$0xff]   ;;  %v1357_v47 = vld [vmem:[#allocation3 + $0x80] ss:$8 sps:$4 sm:$0xff]  }
  0x3c   : > { %v1360_v48 = vld [vmem:[#allocation5 + $0x70] ss:$8 sps:$4 sm:$0xff]   ;;  %v1362_v49 = vld [vmem:[#allocation5 + $0x74] ss:$8 sps:$4 sm:$0xff]   ;;  %v1365_v50 = vld [vmem:[#allocation5 + $0x64] ss:$8 sps:$4 sm:$0xff]  }
  0x3d   : > { %790 = vmatpush1.bf16.msra.mxu0 %v1318_v21  ;;  %1034 = vmatprep.subr.bf16.mxu1 %v1362_v49  ;;  %v1363_v51 = vld [vmem:[#allocation5 + $0x60] ss:$8 sps:$4 sm:$0xff]   ;;  %v1368_v52 = vld [vmem:[#allocation5 + $0x54] ss:$8 sps:$4 sm:$0xff]   ;;  %v1366_v53 = vld [vmem:[#allocation5 + $0x50] ss:$8 sps:$4 sm:$0xff]  }
  0x3e   : > { %791 = vmatprep.subr.bf16.mxu0 %v1323_v22  ;;  %1035 = vmatpush1.bf16.msra.mxu1 %v1360_v48  ;;  %v1371_v54 = vld [vmem:[#allocation5 + $0x44] ss:$8 sps:$4 sm:$0xff]   ;;  %v1369_v55 = vld [vmem:[#allocation5 + $0x40] ss:$8 sps:$4 sm:$0xff]   ;;  %v1374_v56 = vld [vmem:[#allocation5 + $0x34] ss:$8 sps:$4 sm:$0xff]  }
  0x3f   : > { %1036 = vmatprep.subr.bf16.mxu1 %v1365_v50  ;;  %v1372_v57 = vld [vmem:[#allocation5 + $0x30] ss:$8 sps:$4 sm:$0xff]   ;;  %v1377_v58 = vld [vmem:[#allocation5 + $0x24] ss:$8 sps:$4 sm:$0xff]   ;;  %v1375_v59 = vld [vmem:[#allocation5 + $0x20] ss:$8 sps:$4 sm:$0xff]  }
  0x40   : > { %v1380_v60 = vld [vmem:[#allocation5 + $0x14] ss:$8 sps:$4 sm:$0xff]   ;;  %v1378_v61 = vld [vmem:[#allocation5 + $0x10] ss:$8 sps:$4 sm:$0xff]   ;;  %v1383_v62 = vld [vmem:[#allocation5 + $0x4] ss:$8 sps:$4 sm:$0xff]  }
  0x41   : > { %792 = vmatpush1.bf16.msra.mxu0 %v1321_v23  ;;  %v1381_v63 = vld [vmem:[#allocation5] ss:$8 sps:$4 sm:$0xff]   ;;  %v1386_v0 = vld [vmem:[#allocation5 + $0xf4] ss:$8 sps:$4 sm:$0xff]   ;;  %v1384_v1 = vld [vmem:[#allocation5 + $0xf0] ss:$8 sps:$4 sm:$0xff]  }
  0x42   : > { %793 = vmatprep.subr.bf16.mxu0 %v1326_v24  ;;  %1037 = vmatpush1.bf16.msra.mxu1 %v1363_v51  ;;  %v1389_v2 = vld [vmem:[#allocation5 + $0xe4] ss:$8 sps:$4 sm:$0xff]   ;;  %v1387_v3 = vld [vmem:[#allocation5 + $0xe0] ss:$8 sps:$4 sm:$0xff]   ;;  %v1392_v4 = vld [vmem:[#allocation5 + $0xd4] ss:$8 sps:$4 sm:$0xff]  }
  0x43   : > { %1038 = vmatprep.subr.bf16.mxu1 %v1368_v52  ;;  %v1390_v5 = vld [vmem:[#allocation5 + $0xd0] ss:$8 sps:$4 sm:$0xff]   ;;  %v1395_v6 = vld [vmem:[#allocation5 + $0xc4] ss:$8 sps:$4 sm:$0xff]   ;;  %v1393_v7 = vld [vmem:[#allocation5 + $0xc0] ss:$8 sps:$4 sm:$0xff]  }
  0x44   : > { %v1398_v8 = vld [vmem:[#allocation5 + $0xb4] ss:$8 sps:$4 sm:$0xff]   ;;  %v1396_v9 = vld [vmem:[#allocation5 + $0xb0] ss:$8 sps:$4 sm:$0xff]   ;;  %v1401_v10 = vld [vmem:[#allocation5 + $0xa4] ss:$8 sps:$4 sm:$0xff]  }
  0x45   : > { %794 = vmatpush1.bf16.msra.mxu0 %v1324_v25  ;;  %v1399_v11 = vld [vmem:[#allocation5 + $0xa0] ss:$8 sps:$4 sm:$0xff]   ;;  %v566_v13 = vshrl.u32 %v565_v12, 7 }
  0x46   : > { %795 = vmatprep.subr.bf16.mxu0 %v1329_v26  ;;  %1039 = vmatpush1.bf16.msra.mxu1 %v1366_v53  ;;  %v563_v15 = vld [vmem:[%s1640_s4] sm:$0x3] }
  0x47   : > { %1040 = vmatprep.subr.bf16.mxu1 %v1371_v54  ;;  %v567_v14 = vsub.s32 0, %v566_v13  ;;  %v571_v16 = vsub.s32 1, %v566_v13  ;;  %v862_v52 = vld [vmem:[%s1644_s8] sm:$0x3] }
  0x49   : > { %796 = vmatpush1.bf16.msra.mxu0 %v1327_v27  ;;  %v568_v18 = vrot.slane %v563_v15, %v567_v14  ;;  %v572_v22 = vrot.slane %v563_v15, %v571_v16  ;;  %v867_v53 = vrot.slane %v862_v52, %v567_v14  ;;  %v871_v54 = vrot.slane %v862_v52, %v571_v16 }
  0x4a   : > { %797 = vmatprep.subr.bf16.mxu0 %v1332_v28  ;;  %1041 = vmatpush1.bf16.msra.mxu1 %v1369_v55 }
  0x4b   : > { %1042 = vmatprep.subr.bf16.mxu1 %v1374_v56  ;;  %v1077_v56 = vld [vmem:[%s1645_s9] sm:$0x3] }
  0x4d   : > { %798 = vmatpush1.bf16.msra.mxu0 %v1330_v29 }
  0x4e   : > { %799 = vmatprep.subr.bf16.mxu0 %v1335_v30  ;;  %1043 = vmatpush1.bf16.msra.mxu1 %v1372_v57 }
  0x4f   : > { %1044 = vmatprep.subr.bf16.mxu1 %v1377_v58 }
  0x51   : > { %800 = vmatpush1.bf16.msra.mxu0 %v1333_v31 }
  0x52   : > { %801 = vmatprep.subr.bf16.mxu0 %v1338_v32  ;;  %1045 = vmatpush1.bf16.msra.mxu1 %v1375_v59 }
  0x53   : > { %1046 = vmatprep.subr.bf16.mxu1 %v1380_v60 }
  0x55   : > { %802 = vmatpush2.bf16.msra.mxu0 %v1336_v33 }
  0x56   : > { %803 = vmatprep.subr.bf16.mxu0 %v1341_v34  ;;  %1047 = vmatpush1.bf16.msra.mxu1 %v1378_v61  ;;  %v1082_v61 = vrot.slane %v1077_v56, %v567_v14 }
  0x57   : > { %1048 = vmatprep.subr.bf16.mxu1 %v1383_v62  ;;  %v1086_v62 = vrot.slane %v1077_v56, %v571_v16 }
  0x59   : > { %804 = vmatpush2.bf16.msra.mxu0 %v1339_v35  ;;  %v1404_v35 = vld [vmem:[#allocation5 + $0x94] ss:$8 sps:$4 sm:$0xff]  }
  0x5a   : > { %805 = vmatprep.subr.bf16.mxu0 %v1344_v36  ;;  %1049 = vmatpush1.bf16.msra.mxu1 %v1381_v63  ;;  %v1402_v36 = vld [vmem:[#allocation5 + $0x90] ss:$8 sps:$4 sm:$0xff]  }
  0x5b   : > { %1050 = vmatprep.subr.bf16.mxu1 %v1386_v0 }
  0x5d   : > { %806 = vmatpush2.bf16.msra.mxu0 %v1342_v37  ;;  %v1407_v37 = vld [vmem:[#allocation5 + $0x84] ss:$8 sps:$4 sm:$0xff]  }
  0x5e   : > { %807 = vmatprep.subr.bf16.mxu0 %v1347_v38  ;;  %1051 = vmatpush2.bf16.msra.mxu1 %v1384_v1  ;;  %v1405_v38 = vld [vmem:[#allocation5 + $0x80] ss:$8 sps:$4 sm:$0xff]  }
  0x5f   : > { %1052 = vmatprep.subr.bf16.mxu1 %v1389_v2 }
  0x61   : > { %808 = vmatpush2.bf16.msra.mxu0 %v1345_v39  ;;  %v613_v39 = vld [vmem:[%s1642_s6] sm:$0x3] }
  0x62   : > { %809 = vmatprep.subr.bf16.mxu0 %v1350_v40  ;;  %1053 = vmatpush2.bf16.msra.mxu1 %v1387_v3  ;;  %v618_v40 = vrot.slane %v613_v39, %v567_v14 }
  0x63   : > { %1054 = vmatprep.subr.bf16.mxu1 %v1392_v4 }
  0x65   : > { %810 = vmatpush2.bf16.msra.mxu0 %v1348_v41  ;;  %v622_v41 = vrot.slane %v613_v39, %v571_v16 }
  0x66   : > { %811 = vmatprep.subr.bf16.mxu0 %v1353_v42  ;;  %1055 = vmatpush2.bf16.msra.mxu1 %v1390_v5  ;;  %v1273_v5 = vld [vmem:[#allocation2] ss:$0 sm:$0xff] }
  0x67   : > { %1056 = vmatprep.subr.bf16.mxu1 %v1395_v6 }
  0x69   : > { %812 = vmatpush2.bf16.msra.mxu0 %v1351_v43 }
  0x6a   : > { %813 = vmatprep.subr.bf16.mxu0 %v1356_v44  ;;  %1057 = vmatpush2.bf16.msra.mxu1 %v1393_v7 }
  0x6b   : > { %1058 = vmatprep.subr.bf16.mxu1 %v1398_v8 }
  0x6d   : > { %814 = vmatpush2.bf16.msra.mxu0 %v1354_v45 }
  0x6e   : > { %815 = vmatprep.subr.bf16.mxu0 %v1359_v46  ;;  %1059 = vmatpush2.bf16.msra.mxu1 %v1396_v9 }
  0x6f   : > { %1060 = vmatprep.subr.bf16.mxu1 %v1401_v10 }
  0x71   : > { %816 = vmatpush2.bf16.msra.mxu0 %v1357_v47 }
  0x72   : > { %1061 = vmatpush2.bf16.msra.mxu1 %v1399_v11 }
  0x73   : > { %1062 = vmatprep.subr.bf16.mxu1 %v1404_v35 }
  0x76   : > { %1063 = vmatpush2.bf16.msra.mxu1 %v1402_v36 }
  0x77   : > { %1064 = vmatprep.subr.bf16.mxu1 %v1407_v37 }
  0x7a   : > { %1065 = vmatpush2.bf16.msra.mxu1 %v1405_v38 }
  0xf4   : > { %v493_v17 = vpop.f32.mrf.mxu0 }
  0xf6   : > { %v495_v19 = vpop.f32.mrf.mxu0  ;;  %v556_v20 = vpop.f32.mrf.mxu1 }
  0xf7   : > { %v557_v21 = vadd.f32 %v556_v20, %v493_v17 }
  0xf8   : > { %v497_v23 = vpop.f32.mrf.mxu0  ;;  %v558_v24 = vpop.f32.mrf.mxu1 }
  0xf9   : > { %v575_v25 = vadd.f32 %v568_v18, %v557_v21  ;;  %v559_v26 = vadd.f32 %v558_v24, %v495_v19 }
  0xfa   : > { %v498_v27 = vpop.f32.mrf.mxu0  ;;  %v560_v28 = vpop.f32.mrf.mxu1 }
  0xfb   : > { %v576_v29 = vadd.f32 %v572_v22, %v559_v26  ;;  %v577_v30 = vmax.f32 %v575_v25, 0.0 }
  0xfc   : > { %v561_v31 = vpop.f32.mrf.mxu1 }
  0xfd   : > { %v578_v32 = vmax.f32 %v576_v29, 0.0  ;;  %v579_v34 = vpack.c.bf16 %v577_v30, %v577_v30 }
  0xff   : > { %v580_v33 = vpack.c.bf16 %v578_v32, %v578_v32 }
 0x101   : > { %817 = vmatprep.mubr.bf16.mxu0 %v580_v33 }
 0x102   : > { %818 = vmatmul.mubr.bf16.vlgmr.msra.gmra.mxu0 %v579_v34 }
 0x1c2   : > { %v819_v42 = vpop.f32.mrf.mxu0 }
 0x1c3   : > { %v820_v43 = vadd.f32 %v819_v42, %v618_v40 }
 0x1c4   : > { %v821_v44 = vpop.f32.mrf.mxu0 }
 0x1c5   : > { %v822_v45 = vadd.f32 %v821_v44, %v622_v41  ;;  %v826_v46 = vmax.f32 %v820_v43, 0.0 }
 0x1c6   : > { %v823_v47 = vpop.f32.mrf.mxu0 }
 0x1c7   : > { %v827_v48 = vmax.f32 %v822_v45, 0.0  ;;  %v828_v51 = vpack.c.bf16 %v826_v46, %v826_v46 }
 0x1c8   : > { %v824_v49 = vpop.f32.mrf.mxu0 }
 0x1c9   : > { %v829_v50 = vpack.c.bf16 %v827_v48, %v827_v48 }
 0x1cb   : > { %1066 = vmatprep.mubr.bf16.mxu1 %v829_v50 }
 0x1cc   : > { %1067 = vmatmul.mubr.bf16.vlgmr.msra.gmra.mxu1 %v828_v51 }
 0x28c   : > { %v1068_v55 = vpop.f32.mrf.mxu1 }
 0x28d   : > { %v1069_v57 = vadd.f32 %v1068_v55, %v867_v53 }
 0x28e   : > { %v1070_v58 = vpop.f32.mrf.mxu1 }
 0x28f   : > { %v1075_v59 = vmax.f32 %v1069_v57, 0.0  ;;  %v1071_v60 = vadd.f32 %v1070_v58, %v871_v54 }
 0x290   : > { %v1072_v63 = vpop.f32.mrf.mxu1 }
 0x291   : > { %v1076_v0 = vmax.f32 %v1071_v60, 0.0  ;;  %v1089_v2 = vmul.f32 %v1082_v61, %v1075_v59 }
 0x292   : > { %v1073_v1 = vpop.f32.mrf.mxu1 }
 0x293   : > { %v1090_v3 = vmul.f32 %v1086_v62, %v1076_v0 }
 0x295   : > { %v1091_v4 = vadd.f32 %v1090_v3, %v1089_v2 }
 0x297   : > { %1092 = vadd.xlane.f32.xlu0 %v1091_v4 }
 0x320   : > { %v1093_v6 = vpop.xlane.xlu0 %1092 }
 0x321   : > { %v1101_v7 = vadd.f32 %v1273_v5, %v1093_v6 }
 0x323   : > { %1103 = vst.msk [vmem:[%s430_s21] sm:$0xff] %vm1102_vm5, %v1101_v7 }
 0x324 PF: > { %s25_s19 = sadd.s32 1, %s1474_s19  }
 0x325   : > { %p22_p2 = scmp.ge.s32.totalorder %s25_s19, 6  }
 0x327   :  { %24 = sbr.rel (!%p22_p2) target bundleno = 5 (0x5), region = 106 }
 0x32c   :  { %1123 = vsyncpa [#allocation4], 1 }
 0x32d   :  { %1125 = vsyncpa [#allocation4 + $0x1], 1 }
 0x32e   :  { %1126 = vsyncpa [#allocation6], 1 }

</bundles_post_ra>
